<compile_context>
chip_gen: v7x
topology: tpu7x:2x2x1
jax: 0.10.0
libtpu: 0.0.40
codegen_flags: <defaults>
</compile_context>

<pallas_src>
import jax
import jax.numpy as jnp
from jax.experimental import pallas as pl
from jax.experimental.pallas import tpu as pltpu

LANES = 128
SUBLANES = 8


def _round_up(v, m):
    return (v + m - 1) // m * m


# ----------------------------------------------------------------------------
# Kernel body: one batch tile (TB columns) through the whole network.
# All tensors are feature-major / batch-on-lanes: (features, TB).
# ----------------------------------------------------------------------------
def dmlp_kernel(n_ref, x_ref,
                wk_ref, phase_ref, scale2_ref,
                w_in_ref, b_in_ref,
                w_h_ref, b_h_ref,
                w_o1_ref, b_o1_ref,
                w_o2_ref, b_o2_ref,
                out_ref):
    L = w_h_ref.shape[0]  # layer_num (static)

    # ---- PositionalEncoding (single EUP sin pass) ----
    # pe = [sin(n*wk); cos(n*wk)] * scale^2 == sin(wk_full*n + phase) * scale2
    n = n_ref[...]                                                     # (1, TB)
    pe = jnp.sin(wk_ref[...] * n + phase_ref[...]) * scale2_ref[...]   # (H, TB)

    # ---- in_layer: Linear(Din, H) + Tanh ----
    y = jnp.tanh(
        jnp.dot(w_in_ref[...], x_ref[...], preferred_element_type=jnp.float32)
        + b_in_ref[...]
    )                                                                  # (H, TB)

    # ---- hidden layers: y = Tanh(Linear(y + pe)) ---- (statically unrolled)
    for i in range(L):
        y = jnp.tanh(
            jnp.dot(w_h_ref[i], y + pe, preferred_element_type=jnp.float32)
            + b_h_ref[i]
        )

    # ---- out_layer: Linear(H, H) + Tanh + Linear(H, Dout) ----
    y = jnp.tanh(
        jnp.dot(w_o1_ref[...], y, preferred_element_type=jnp.float32)
        + b_o1_ref[...]
    )
    out_ref[...] = (
        jnp.dot(w_o2_ref[...], y, preferred_element_type=jnp.float32)
        + b_o2_ref[...]
    )                                                                  # (Dout, TB)


# ----------------------------------------------------------------------------
# Wrapper: transposes to batch-last once, pads batch to 128-lane multiples only
# when needed, builds the batch grid, transposes back.
# ----------------------------------------------------------------------------
def dmlp_forward(n, x, params, output_dim, *, tile_b=None):
    B, Din = x.shape
    H = params["wk_full"].shape[0]
    Dout = params["w_o2"].shape[0]
    L = params["w_h"].shape[0]
    assert Dout == output_dim

    B_pad = _round_up(B, LANES)
    if tile_b is None:
        # >= 2 lane-multiple tiles when the batch allows (feeds both v7x TCs);
        # single-TC v5e/v6e callers can pass tile_b >= B to collapse the grid.
        tile_b = max(LANES, min(B_pad // 2, 1024))
    tb = max(LANES, min(_round_up(tile_b, LANES), B_pad))
    B_pad = _round_up(B_pad, tb)

    # one transpose each; padding only materializes for a ragged batch
    nT = jnp.reshape(n, (1, B)).astype(jnp.float32)
    xT = x.T.astype(jnp.float32)
    if B_pad != B:
        nT = jnp.zeros((1, B_pad), jnp.float32).at[:, :B].set(nT)
        xT = jnp.zeros((Din, B_pad), jnp.float32).at[:, :B].set(xT)

    grid = (B_pad // tb,)
    batch_map = lambda b: (0, b)      # tile along the lane (batch) axis
    const2 = lambda b: (0, 0)
    const3 = lambda b: (0, 0, 0)

    # advisory cost so XLA overlaps the surrounding transpose/slice ops
    weight_args = (params["wk_full"], params["phase_off"], params["scale2"],
                   params["w_in"], params["b_in"], params["w_h"], params["b_h"],
                   params["w_o1"], params["b_o1"], params["w_o2"], params["b_o2"])
    weight_elems = sum(int(a.size) for a in weight_args)
    cost = pl.CostEstimate(
        flops=int(2 * B_pad * (Din * H + (L + 1) * H * H + H * Dout)
                  + 4 * B_pad * H * (L + 2)),
        transcendentals=int(B_pad * H * (L + 3)),
        bytes_accessed=int(4 * (B_pad * (1 + Din + Dout) + weight_elems)),
    )

    out_padded = pl.pallas_call(
        dmlp_kernel,
        out_shape=jax.ShapeDtypeStruct((Dout, B_pad), jnp.float32),
        grid_spec=pltpu.PrefetchScalarGridSpec(
            num_scalar_prefetch=0,
            grid=grid,
            in_specs=[
                pl.BlockSpec((1, tb), batch_map),                 # n      (1, TB)
                pl.BlockSpec((Din, tb), batch_map),               # x      (Din, TB)
                pl.BlockSpec((H, 1), const2),                     # wk_full
                pl.BlockSpec((H, 1), const2),                     # phase_off
                pl.BlockSpec((H, 1), const2),                     # scale2
                pl.BlockSpec((H, Din), const2),                   # w_in   (H, Din)
                pl.BlockSpec((H, 1), const2),                     # b_in
                pl.BlockSpec(params["w_h"].shape, const3),        # w_h    (L, H, H)
                pl.BlockSpec(params["b_h"].shape, const3),        # b_h    (L, H, 1)
                pl.BlockSpec((H, H), const2),                     # w_o1
                pl.BlockSpec((H, 1), const2),                     # b_o1
                pl.BlockSpec((Dout, H), const2),                  # w_o2   (Dout, H)
                pl.BlockSpec((Dout, 1), const2),                  # b_o2
            ],
            out_specs=pl.BlockSpec((Dout, tb), batch_map),
        ),
        compiler_params=pltpu.CompilerParams(
            dimension_semantics=("parallel",),
        ),
        cost_estimate=cost,
    )(nT, xT,
      params["wk_full"], params["phase_off"], params["scale2"],
      params["w_in"], params["b_in"],
      params["w_h"], params["b_h"],
      params["w_o1"], params["b_o1"],
      params["w_o2"], params["b_o2"])

    return out_padded[:, :B].T


# ----------------------------------------------------------------------------
# Parameter init (mirrors the PyTorch module; weights stored (out, in)).
# ----------------------------------------------------------------------------
def init_params(key, input_dim, output_dim, hidden_dim, layer_num):
    keys = jax.random.split(key, 4 + layer_num)
    H = hidden_dim

    # PositionalEncoding buffers / params (feature-major columns)
    wk = 1.0 / (10.0 ** (8.0 * jnp.arange(0, H // 2, dtype=jnp.float32) / H))  # (H/2,)
    wk_full = jnp.concatenate([wk, wk]).reshape(H, 1)                          # (H, 1)
    # baked phase offset: 0 for sin half, pi/2 for cos half (sin(x+pi/2)=cos(x))
    phase_off = jnp.concatenate(
        [jnp.zeros((H // 2,), jnp.float32),
         jnp.full((H // 2,), jnp.pi / 2, jnp.float32)]).reshape(H, 1)
    scale_n = jax.random.normal(keys[0], (H,)) / jnp.sqrt(jnp.float32(H))
    scale2 = (scale_n ** 2).reshape(H, 1)                                      # precomputed on host

    def lin_t(k, fan_in, fan_out):
        # nn.Linear default init: U(-1/sqrt(fan_in), 1/sqrt(fan_in)); stored (out, in)
        bound = 1.0 / jnp.sqrt(jnp.float32(fan_in))
        kw, kb = jax.random.split(k)
        w = jax.random.uniform(kw, (fan_out, fan_in), jnp.float32, -bound, bound)
        b = jax.random.uniform(kb, (fan_out, 1), jnp.float32, -bound, bound)
        return w, b

    w_in, b_in = lin_t(keys[1], input_dim, H)                 # (H, Din), (H, 1)

    w_hs, b_hs = [], []
    for i in range(layer_num):
        w, b = lin_t(keys[2 + i], H, H)
        w_hs.append(w)
        b_hs.append(b)
    w_h = jnp.stack(w_hs)                                     # (L, H, H)
    b_h = jnp.stack(b_hs)                                     # (L, H, 1)

    w_o1, b_o1 = lin_t(keys[2 + layer_num], H, H)             # (H, H), (H, 1)
    w_o2, b_o2 = lin_t(keys[3 + layer_num], H, output_dim)    # (Dout, H), (Dout, 1)

    return dict(wk_full=wk_full, phase_off=phase_off, scale2=scale2,
                w_in=w_in, b_in=b_in, w_h=w_h, b_h=b_h,
                w_o1=w_o1, b_o1=b_o1, w_o2=w_o2, b_o2=b_o2,
                input_dim=input_dim, output_dim=output_dim)


# ----------------------------------------------------------------------------
# Pure-JAX reference mirroring the PyTorch forward exactly (batch-major).
# ----------------------------------------------------------------------------
def dmlp_reference(n, x, params):
    H = params["wk_full"].shape[0]
    wk = params["wk_full"][: H // 2, 0].reshape(1, H // 2)
    pe = jnp.concatenate([jnp.sin(n * wk), jnp.cos(n * wk)], axis=1)
    pe = pe * params["scale2"][:, 0]

    hi = jax.lax.Precision.HIGHEST
    y = jnp.tanh(jnp.dot(x, params["w_in"].T, precision=hi) + params["b_in"][:, 0])
    for i in range(params["w_h"].shape[0]):
        y = jnp.tanh(jnp.dot(y + pe, params["w_h"][i].T, precision=hi)
                     + params["b_h"][i, :, 0])
    y = jnp.tanh(jnp.dot(y, params["w_o1"].T, precision=hi) + params["b_o1"][:, 0])
    return jnp.dot(y, params["w_o2"].T, precision=hi) + params["b_o2"][:, 0]


if __name__ == "__main__":
    # TODO(synk): batch_norm=True prefix (nn.BatchNorm1d) not implemented; the
    # module default (batch_norm=False) path is what the kernel covers.
    B, input_dim, output_dim, hidden_dim, layer_num = 256, 4, 8, 32, 3

    key = jax.random.PRNGKey(0)
    k_n, k_x, k_p = jax.random.split(key, 3)

    n = jax.random.uniform(k_n, (B, 1), jnp.float32, 0.0, 10.0)   # positions
    x = jax.random.normal(k_x, (B, input_dim), jnp.float32)
    params = init_params(k_p, input_dim, output_dim, hidden_dim, layer_num)

    out = dmlp_forward(n, x, params, output_dim)
    out = jax.block_until_ready(out)

    ref = dmlp_reference(n, x, params)
    assert out.shape == (B, output_dim)
    assert jnp.allclose(out, ref, atol=2e-5, rtol=2e-5), "mismatch vs reference"

    print("KERNEL_OK")
</pallas_src>

<mosaic_0001>
module attributes {stable_mosaic.version = 11 : i64} {
  func.func @dmlp_kernel(%arg0: i32, %arg1: memref<1x128xf32, #tpu.memory_space<vmem>>, %arg2: memref<4x128xf32, #tpu.memory_space<vmem>>, %arg3: memref<32x1xf32, #tpu.memory_space<vmem>>, %arg4: memref<32x1xf32, #tpu.memory_space<vmem>>, %arg5: memref<32x1xf32, #tpu.memory_space<vmem>>, %arg6: memref<32x4xf32, #tpu.memory_space<vmem>>, %arg7: memref<32x1xf32, #tpu.memory_space<vmem>>, %arg8: memref<3x32x32xf32, #tpu.memory_space<vmem>>, %arg9: memref<3x32x1xf32, #tpu.memory_space<vmem>>, %arg10: memref<32x32xf32, #tpu.memory_space<vmem>>, %arg11: memref<32x1xf32, #tpu.memory_space<vmem>>, %arg12: memref<8x32xf32, #tpu.memory_space<vmem>>, %arg13: memref<8x1xf32, #tpu.memory_space<vmem>>, %arg14: memref<8x128xf32, #tpu.memory_space<vmem>>) attributes {dimension_semantics = [#tpu.dimension_semantics<parallel>], iteration_bounds = array<i64: 2>, scalar_prefetch = 0 : i64, scratch_operands = 0 : i64, tpu.core_type = #tpu.core_type<tc>, window_params = [{transform_indices = @transform_0, window_bounds = array<i64: 1, 128>}, {transform_indices = @transform_1, window_bounds = array<i64: 4, 128>}, {pipeline_mode = #tpu.pipeline_mode<synchronous>, transform_indices = @transform_2, window_bounds = array<i64: 32, 1>}, {pipeline_mode = #tpu.pipeline_mode<synchronous>, transform_indices = @transform_3, window_bounds = array<i64: 32, 1>}, {pipeline_mode = #tpu.pipeline_mode<synchronous>, transform_indices = @transform_4, window_bounds = array<i64: 32, 1>}, {pipeline_mode = #tpu.pipeline_mode<synchronous>, transform_indices = @transform_5, window_bounds = array<i64: 32, 4>}, {pipeline_mode = #tpu.pipeline_mode<synchronous>, transform_indices = @transform_6, window_bounds = array<i64: 32, 1>}, {pipeline_mode = #tpu.pipeline_mode<synchronous>, transform_indices = @transform_7, window_bounds = array<i64: 3, 32, 32>}, {pipeline_mode = #tpu.pipeline_mode<synchronous>, transform_indices = @transform_8, window_bounds = array<i64: 3, 32, 1>}, {pipeline_mode = #tpu.pipeline_mode<synchronous>, transform_indices = @transform_9, window_bounds = array<i64: 32, 32>}, {pipeline_mode = #tpu.pipeline_mode<synchronous>, transform_indices = @transform_10, window_bounds = array<i64: 32, 1>}, {pipeline_mode = #tpu.pipeline_mode<synchronous>, transform_indices = @transform_11, window_bounds = array<i64: 8, 32>}, {pipeline_mode = #tpu.pipeline_mode<synchronous>, transform_indices = @transform_12, window_bounds = array<i64: 8, 1>}, {transform_indices = @transform_13, window_bounds = array<i64: 8, 128>}]} {
    %c0 = arith.constant 0 : index
    %c0_0 = arith.constant 0 : index
    %0 = vector.load %arg1[%c0, %c0_0] : memref<1x128xf32, #tpu.memory_space<vmem>>, vector<1x128xf32>
    %c0_1 = arith.constant 0 : index
    %c0_2 = arith.constant 0 : index
    %1 = vector.load %arg3[%c0_1, %c0_2] : memref<32x1xf32, #tpu.memory_space<vmem>>, vector<32x1xf32>
    %2 = vector.broadcast %1 : vector<32x1xf32> to vector<32x128xf32>
    %3 = vector.broadcast %0 : vector<1x128xf32> to vector<32x128xf32>
    %4 = arith.mulf %2, %3 : vector<32x128xf32>
    %c0_3 = arith.constant 0 : index
    %c0_4 = arith.constant 0 : index
    %5 = vector.load %arg4[%c0_3, %c0_4] : memref<32x1xf32, #tpu.memory_space<vmem>>, vector<32x1xf32>
    %6 = vector.broadcast %5 : vector<32x1xf32> to vector<32x128xf32>
    %7 = arith.addf %4, %6 : vector<32x128xf32>
    %8 = math.sin %7 : vector<32x128xf32>
    %c0_5 = arith.constant 0 : index
    %c0_6 = arith.constant 0 : index
    %9 = vector.load %arg5[%c0_5, %c0_6] : memref<32x1xf32, #tpu.memory_space<vmem>>, vector<32x1xf32>
    %10 = vector.broadcast %9 : vector<32x1xf32> to vector<32x128xf32>
    %11 = arith.mulf %8, %10 : vector<32x128xf32>
    %c0_7 = arith.constant 0 : index
    %c0_8 = arith.constant 0 : index
    %12 = vector.load %arg6[%c0_7, %c0_8] : memref<32x4xf32, #tpu.memory_space<vmem>>, vector<32x4xf32>
    %c0_9 = arith.constant 0 : index
    %c0_10 = arith.constant 0 : index
    %13 = vector.load %arg2[%c0_9, %c0_10] : memref<4x128xf32, #tpu.memory_space<vmem>>, vector<4x128xf32>
    %cst = arith.constant dense<0.000000e+00> : vector<32x128xf32>
    %14 = tpu.matmul %12, %13, %cst {dimension_numbers = #tpu.dot_dimension_numbers<[1], [0], [0], [1], [0, 0, 1, 1], [], []>} : vector<32x4xf32>, vector<4x128xf32>, vector<32x128xf32> -> vector<32x128xf32>
    %c0_11 = arith.constant 0 : index
    %c0_12 = arith.constant 0 : index
    %15 = vector.load %arg7[%c0_11, %c0_12] : memref<32x1xf32, #tpu.memory_space<vmem>>, vector<32x1xf32>
    %16 = vector.broadcast %15 : vector<32x1xf32> to vector<32x128xf32>
    %17 = arith.addf %14, %16 : vector<32x128xf32>
    %18 = math.tanh %17 : vector<32x128xf32>
    %c0_13 = arith.constant 0 : index
    %c0_14 = arith.constant 0 : index
    %c0_15 = arith.constant 0 : index
    %19 = vector.load %arg8[%c0_13, %c0_14, %c0_15] : memref<3x32x32xf32, #tpu.memory_space<vmem>>, vector<1x32x32xf32>
    %20 = vector.shape_cast %19 : vector<1x32x32xf32> to vector<32x32xf32>
    %21 = arith.addf %18, %11 : vector<32x128xf32>
    %cst_16 = arith.constant dense<0.000000e+00> : vector<32x128xf32>
    %22 = tpu.matmul %20, %21, %cst_16 {dimension_numbers = #tpu.dot_dimension_numbers<[1], [0], [0], [1], [0, 0, 1, 1], [], []>} : vector<32x32xf32>, vector<32x128xf32>, vector<32x128xf32> -> vector<32x128xf32>
    %c0_17 = arith.constant 0 : index
    %c0_18 = arith.constant 0 : index
    %c0_19 = arith.constant 0 : index
    %23 = vector.load %arg9[%c0_17, %c0_18, %c0_19] : memref<3x32x1xf32, #tpu.memory_space<vmem>>, vector<1x32x1xf32>
    %24 = vector.shape_cast %23 : vector<1x32x1xf32> to vector<32x1xf32>
    %25 = vector.broadcast %24 : vector<32x1xf32> to vector<32x128xf32>
    %26 = arith.addf %22, %25 : vector<32x128xf32>
    %27 = math.tanh %26 : vector<32x128xf32>
    %c1 = arith.constant 1 : index
    %c0_20 = arith.constant 0 : index
    %c0_21 = arith.constant 0 : index
    %28 = vector.load %arg8[%c1, %c0_20, %c0_21] : memref<3x32x32xf32, #tpu.memory_space<vmem>>, vector<1x32x32xf32>
    %29 = vector.shape_cast %28 : vector<1x32x32xf32> to vector<32x32xf32>
    %30 = arith.addf %27, %11 : vector<32x128xf32>
    %cst_22 = arith.constant dense<0.000000e+00> : vector<32x128xf32>
    %31 = tpu.matmul %29, %30, %cst_22 {dimension_numbers = #tpu.dot_dimension_numbers<[1], [0], [0], [1], [0, 0, 1, 1], [], []>} : vector<32x32xf32>, vector<32x128xf32>, vector<32x128xf32> -> vector<32x128xf32>
    %c1_23 = arith.constant 1 : index
    %c0_24 = arith.constant 0 : index
    %c0_25 = arith.constant 0 : index
    %32 = vector.load %arg9[%c1_23, %c0_24, %c0_25] : memref<3x32x1xf32, #tpu.memory_space<vmem>>, vector<1x32x1xf32>
    %33 = vector.shape_cast %32 : vector<1x32x1xf32> to vector<32x1xf32>
    %34 = vector.broadcast %33 : vector<32x1xf32> to vector<32x128xf32>
    %35 = arith.addf %31, %34 : vector<32x128xf32>
    %36 = math.tanh %35 : vector<32x128xf32>
    %c2 = arith.constant 2 : index
    %c0_26 = arith.constant 0 : index
    %c0_27 = arith.constant 0 : index
    %37 = vector.load %arg8[%c2, %c0_26, %c0_27] : memref<3x32x32xf32, #tpu.memory_space<vmem>>, vector<1x32x32xf32>
    %38 = vector.shape_cast %37 : vector<1x32x32xf32> to vector<32x32xf32>
    %39 = arith.addf %36, %11 : vector<32x128xf32>
    %cst_28 = arith.constant dense<0.000000e+00> : vector<32x128xf32>
    %40 = tpu.matmul %38, %39, %cst_28 {dimension_numbers = #tpu.dot_dimension_numbers<[1], [0], [0], [1], [0, 0, 1, 1], [], []>} : vector<32x32xf32>, vector<32x128xf32>, vector<32x128xf32> -> vector<32x128xf32>
    %c2_29 = arith.constant 2 : index
    %c0_30 = arith.constant 0 : index
    %c0_31 = arith.constant 0 : index
    %41 = vector.load %arg9[%c2_29, %c0_30, %c0_31] : memref<3x32x1xf32, #tpu.memory_space<vmem>>, vector<1x32x1xf32>
    %42 = vector.shape_cast %41 : vector<1x32x1xf32> to vector<32x1xf32>
    %43 = vector.broadcast %42 : vector<32x1xf32> to vector<32x128xf32>
    %44 = arith.addf %40, %43 : vector<32x128xf32>
    %45 = math.tanh %44 : vector<32x128xf32>
    %c0_32 = arith.constant 0 : index
    %c0_33 = arith.constant 0 : index
    %46 = vector.load %arg10[%c0_32, %c0_33] : memref<32x32xf32, #tpu.memory_space<vmem>>, vector<32x32xf32>
    %cst_34 = arith.constant dense<0.000000e+00> : vector<32x128xf32>
    %47 = tpu.matmul %46, %45, %cst_34 {dimension_numbers = #tpu.dot_dimension_numbers<[1], [0], [0], [1], [0, 0, 1, 1], [], []>} : vector<32x32xf32>, vector<32x128xf32>, vector<32x128xf32> -> vector<32x128xf32>
    %c0_35 = arith.constant 0 : index
    %c0_36 = arith.constant 0 : index
    %48 = vector.load %arg11[%c0_35, %c0_36] : memref<32x1xf32, #tpu.memory_space<vmem>>, vector<32x1xf32>
    %49 = vector.broadcast %48 : vector<32x1xf32> to vector<32x128xf32>
    %50 = arith.addf %47, %49 : vector<32x128xf32>
    %51 = math.tanh %50 : vector<32x128xf32>
    %c0_37 = arith.constant 0 : index
    %c0_38 = arith.constant 0 : index
    %52 = vector.load %arg12[%c0_37, %c0_38] : memref<8x32xf32, #tpu.memory_space<vmem>>, vector<8x32xf32>
    %cst_39 = arith.constant dense<0.000000e+00> : vector<8x128xf32>
    %53 = tpu.matmul %52, %51, %cst_39 {dimension_numbers = #tpu.dot_dimension_numbers<[1], [0], [0], [1], [0, 0, 1, 1], [], []>} : vector<8x32xf32>, vector<32x128xf32>, vector<8x128xf32> -> vector<8x128xf32>
    %c0_40 = arith.constant 0 : index
    %c0_41 = arith.constant 0 : index
    %54 = vector.load %arg13[%c0_40, %c0_41] : memref<8x1xf32, #tpu.memory_space<vmem>>, vector<8x1xf32>
    %55 = vector.broadcast %54 : vector<8x1xf32> to vector<8x128xf32>
    %56 = arith.addf %53, %55 : vector<8x128xf32>
    %c0_42 = arith.constant 0 : index
    %c0_43 = arith.constant 0 : index
    %57 = vector.load %arg14[%c0_42, %c0_43] : memref<8x128xf32, #tpu.memory_space<vmem>>, vector<8x128xf32>
    tpu.vector_store %arg14[%c0_42, %c0_43], %56 {strides = array<i32>} : memref<8x128xf32, #tpu.memory_space<vmem>>, vector<8x128xf32>,
    return
  }
  func.func @transform_0(%arg0: i32) -> (i32, i32) {
    %c0_i32 = arith.constant 0 : i32
    %c0_i32_0 = arith.constant 0 : i32
    return %c0_i32, %arg0 : i32, i32
  }
  func.func @transform_1(%arg0: i32) -> (i32, i32) {
    %c0_i32 = arith.constant 0 : i32
    %c0_i32_0 = arith.constant 0 : i32
    return %c0_i32, %arg0 : i32, i32
  }
  func.func @transform_2(%arg0: i32) -> (i32, i32) {
    %c0_i32 = arith.constant 0 : i32
    %c0_i32_0 = arith.constant 0 : i32
    %c0_i32_1 = arith.constant 0 : i32
    return %c0_i32, %c0_i32_0 : i32, i32
  }
  func.func @transform_3(%arg0: i32) -> (i32, i32) {
    %c0_i32 = arith.constant 0 : i32
    %c0_i32_0 = arith.constant 0 : i32
    %c0_i32_1 = arith.constant 0 : i32
    return %c0_i32, %c0_i32_0 : i32, i32
  }
  func.func @transform_4(%arg0: i32) -> (i32, i32) {
    %c0_i32 = arith.constant 0 : i32
    %c0_i32_0 = arith.constant 0 : i32
    %c0_i32_1 = arith.constant 0 : i32
    return %c0_i32, %c0_i32_0 : i32, i32
  }
  func.func @transform_5(%arg0: i32) -> (i32, i32) {
    %c0_i32 = arith.constant 0 : i32
    %c0_i32_0 = arith.constant 0 : i32
    %c0_i32_1 = arith.constant 0 : i32
    return %c0_i32, %c0_i32_0 : i32, i32
  }
  func.func @transform_6(%arg0: i32) -> (i32, i32) {
    %c0_i32 = arith.constant 0 : i32
    %c0_i32_0 = arith.constant 0 : i32
    %c0_i32_1 = arith.constant 0 : i32
    return %c0_i32, %c0_i32_0 : i32, i32
  }
  func.func @transform_7(%arg0: i32) -> (i32, i32, i32) {
    %c0_i32 = arith.constant 0 : i32
    %c0_i32_0 = arith.constant 0 : i32
    %c0_i32_1 = arith.constant 0 : i32
    %c0_i32_2 = arith.constant 0 : i32
    return %c0_i32, %c0_i32_0, %c0_i32_1 : i32, i32, i32
  }
  func.func @transform_8(%arg0: i32) -> (i32, i32, i32) {
    %c0_i32 = arith.constant 0 : i32
    %c0_i32_0 = arith.constant 0 : i32
    %c0_i32_1 = arith.constant 0 : i32
    %c0_i32_2 = arith.constant 0 : i32
    return %c0_i32, %c0_i32_0, %c0_i32_1 : i32, i32, i32
  }
  func.func @transform_9(%arg0: i32) -> (i32, i32) {
    %c0_i32 = arith.constant 0 : i32
    %c0_i32_0 = arith.constant 0 : i32
    %c0_i32_1 = arith.constant 0 : i32
    return %c0_i32, %c0_i32_0 : i32, i32
  }
  func.func @transform_10(%arg0: i32) -> (i32, i32) {
    %c0_i32 = arith.constant 0 : i32
    %c0_i32_0 = arith.constant 0 : i32
    %c0_i32_1 = arith.constant 0 : i32
    return %c0_i32, %c0_i32_0 : i32, i32
  }
  func.func @transform_11(%arg0: i32) -> (i32, i32) {
    %c0_i32 = arith.constant 0 : i32
    %c0_i32_0 = arith.constant 0 : i32
    %c0_i32_1 = arith.constant 0 : i32
    return %c0_i32, %c0_i32_0 : i32, i32
  }
  func.func @transform_12(%arg0: i32) -> (i32, i32) {
    %c0_i32 = arith.constant 0 : i32
    %c0_i32_0 = arith.constant 0 : i32
    %c0_i32_1 = arith.constant 0 : i32
    return %c0_i32, %c0_i32_0 : i32, i32
  }
  func.func @transform_13(%arg0: i32) -> (i32, i32) {
    %c0_i32 = arith.constant 0 : i32
    %c0_i32_0 = arith.constant 0 : i32
    return %c0_i32, %arg0 : i32, i32
  }
}

</mosaic_0001>

<bundles_post_ra>
// kernel: tpu_custom_call.1
= control target key start
LH: loop header
LB: loop body
LE: loop exit
PB: predicated region body
PF: predicated region fallthrough
CT: control target
= control target key end

     0   :  { %18 = vsyncpa [#allocation3], 0  ;;  %s2965_s0 = inlined_call_operand.vmem [shape: f32[1,256], index: 0, kind: input, shape index: {}]   ;;  %s2966_s1 = inlined_call_operand.vmem [shape: f32[4,256], index: 1, kind: input, shape index: {}]   ;;  %s2967_s2 = inlined_call_operand.vmem [shape: f32[32,1], index: 2, kind: input, shape index: {}]   ;;  %s2968_s3 = inlined_call_operand.vmem [shape: f32[32,1], index: 3, kind: input, shape index: {}]   ;;  %s2969_s4 = inlined_call_operand.vmem [shape: f32[32,1], index: 4, kind: input, shape index: {}]   ;;  %s2970_s5 = inlined_call_operand.vmem [shape: f32[32,4], index: 5, kind: input, shape index: {}]   ;;  %s2971_s6 = inlined_call_operand.vmem [shape: f32[32,1], index: 6, kind: input, shape index: {}]   ;;  %s2972_s7 = inlined_call_operand.vmem [shape: f32[3,32,32], index: 7, kind: input, shape index: {}]   ;;  %s2973_s8 = inlined_call_operand.vmem [shape: f32[3,32,1], index: 8, kind: input, shape index: {}]   ;;  %s2974_s9 = inlined_call_operand.vmem [shape: f32[32,32], index: 9, kind: input, shape index: {}]   ;;  %s2975_s10 = inlined_call_operand.vmem [shape: f32[32,1], index: 10, kind: input, shape index: {}]   ;;  %s2976_s11 = inlined_call_operand.vmem [shape: f32[8,32], index: 11, kind: input, shape index: {}]   ;;  %s2977_s12 = inlined_call_operand.vmem [shape: f32[8,1], index: 12, kind: input, shape index: {}]   ;;  %s2978_s13 = inlined_call_operand.hbm [shape: f32[8,256], index: 13, kind: output, shape index: {}]  }
   0x1   :  { %20 = vsyncpa [#allocation3 + $0x1], 0  ;;  %s2276_s25 = smov 0   ;;  %s2278_s26 = smov 0  }
   0x2   :  { %s2280_s27 = smov 0   ;;  %s2282_s28 = smov 0  }
   0x3 LB: > { %2983 = sst [smem:[#allocation5_spill]] %s2189_s27  ;;  %s2297_s29 = sadd.s32 4294967295, %s2193_s28   ;;  %s2193_s28 = sphi %s2282_s28, %s2996_s28   ;;  %s2189_s27 = sphi %s2280_s27, %s2998_s27   ;;  %s2185_s26 = sphi %s2278_s26, %s3000_s26   ;;  %s2181_s25 = sphi %s2276_s25, %s2999_s25  }
   0x4   : > { %s1788_s30 = sadd.s32 4294967294, %s2193_s28   ;;  %s2301_s14 = sadd.s32 1, %s2193_s28  }
   0x5   : > { %2984 = sst [smem:[#allocation6_spill]] %s2301_s14  ;;  %s316_s15 = sadd.s32 1, %s2189_s27 }
   0x6   : > { %s313_s16 = ssub.s32 %s2193_s28, %s2301_s14  ;;  %p326_p0 = scmp.ne.s32.totalorder %s2189_s27, %s2185_s26 }
   0x7   : > { %p314_p1 = scmp.eq.s32.totalorder %s313_s16, 0  ;;  %p327_p2 = scmp.eq.s32.totalorder %s2297_s29, 1 }
   0x8   : > { %p332_p3 = scmp.ne.s32.totalorder %s2185_s26, %s2181_s25  ;;  %p333_p4 = scmp.eq.s32.totalorder %s1788_s30, 1 }
   0x9   : > { %s2312_s17 = scalar_select %p314_p1, %s2189_s27, %s316_s15  }
   0xa   : > { %p2314_p5 = por %p327_p2, %p326_p0  ;;  %p2318_p6 = por %p333_p4, %p332_p3 }
   0xb   : > { %2985 = sst [smem:[#allocation7_spill]] %s2312_s17  ;;  %p1791_p7 = scmp.ge.s32.totalorder %s2193_s28, 1 }
   0xc   : > { %s2987_s19 = scalar_select %p2318_p6, 1, 0 }
   0xd   : > { %p397_p8 = scmp.lt.s32.totalorder %s2193_s28, 3 }
   0xe   : > { %2988 = sst [smem:[#allocation8_spill]] %s2987_s19 }
   0xf   : > { %p398_p9 = pnand %p1791_p7, %p397_p8 }
  0x10   : > { %v485_v0 = vld [vmem:[%s2968_s3] sm:$0xff] (!%p398_p9)  ;;  %p443_p10 = scmp.lt.s32.totalorder (!%p398_p9), %s2297_s29, 1  ;;  %v2195_v2 = vmov (!%p398_p9), 0   ;;  %vm986_vm0 = vcmask (!%p398_p9), 31744   ;;  %v486_v4 = vld [vmem:[%s2968_s3 + $0x8] sm:$0xff] (!%p398_p9)  ;;  %vm999_vm1 = vcmask (!%p398_p9), 1043456  }
  0x11   : > { %401 = sbr.rel (%p398_p9) target bundleno = 1467 (0x5bb), region = 72  ;;  %v451_v1 = vld [vmem:[%s2967_s2] sm:$0xff] (!%p398_p9)  ;;  %2074 = vset.pattern.permute.xlu1 (!%p398_p9), %v2195_v2  ;;  %2073 = vset.pattern.permute.xlu0 (!%p398_p9), %v2195_v2  ;;  %v452_v5 = vld [vmem:[%s2967_s2 + $0x8] sm:$0xff] (!%p398_p9)  ;;  %v454_v8 = vld [vmem:[%s2967_s2 + $0x18] sm:$0xff] (!%p398_p9) }
  0x12   : > { %v957_v3 = vld [vmem:[%s2970_s5] sm:$0xff] (!%p398_p9)  ;;  %491 = vperm.xlu1 (!%p398_p9), %2074, %v485_v0   ;;  %457 = vperm.xlu0 (!%p398_p9), %2073, %v451_v1   ;;  %v958_v7 = vld [vmem:[%s2970_s5 + $0x8] sm:$0xff] (!%p398_p9)  ;;  %v453_v9 = vld [vmem:[%s2967_s2 + $0x10] sm:$0xff] (!%p398_p9) }
  0x13   : > { %1897 = vmatprep.mubr.msk.f32.mxu0 (!%p398_p9), %vm986_vm0, %v957_v3  ;;  %v959_v10 = vld [vmem:[%s2970_s5 + $0x10] sm:$0xff] (!%p398_p9)  ;;  %v960_v11 = vld [vmem:[%s2970_s5 + $0x18] sm:$0xff] (!%p398_p9)  ;;  %v963_v14 = vld [vmem:[%s2971_s6 + $0x8] sm:$0xff] (!%p398_p9) }
  0x14   : > { %v488_v12 = vld [vmem:[%s2968_s3 + $0x18] sm:$0xff] (!%p398_p9)  ;;  %v487_v13 = vld [vmem:[%s2968_s3 + $0x10] sm:$0xff] (!%p398_p9)  ;;  %v962_v15 = vld [vmem:[%s2971_s6] sm:$0xff] (!%p398_p9) }
  0x15   : > { %v965_v16 = vld [vmem:[%s2971_s6 + $0x18] sm:$0xff] (!%p398_p9)  ;;  %v964_v17 = vld [vmem:[%s2971_s6 + $0x10] sm:$0xff] (!%p398_p9)  ;;  %v930_v18 = vld [vmem:[%s2969_s4 + $0x8] sm:$0xff] (!%p398_p9) }
  0x16   : > { %496 = vperm.xlu1 (!%p398_p9), %2074, %v486_v4   ;;  %462 = vperm.xlu0 (!%p398_p9), %2073, %v452_v5   ;;  %v929_v19 = vld [vmem:[%s2969_s4] sm:$0xff] (!%p398_p9)  ;;  %v932_v20 = vld [vmem:[%s2969_s4 + $0x18] sm:$0xff] (!%p398_p9)  ;;  %v931_v21 = vld [vmem:[%s2969_s4 + $0x10] sm:$0xff] (!%p398_p9) }
  0x17   : > { %v1101_v22 = vld [vmem:[%s2973_s8 + $0x8] sm:$0xff] (!%p398_p9)  ;;  %v1100_v23 = vld [vmem:[%s2973_s8] sm:$0xff] (!%p398_p9)  ;;  %v1103_v24 = vld [vmem:[%s2973_s8 + $0x18] sm:$0xff] (!%p398_p9) }
  0x18   : > { %s2335_s15 = scalar_select %p443_p10, %s2297_s29, 1  ;;  %v1102_v25 = vld [vmem:[%s2973_s8 + $0x10] sm:$0xff]  ;;  %v1825_v26 = vld [vmem:[%s2973_s8 + $0x28] sm:$0xff]  ;;  %v1824_v27 = vld [vmem:[%s2973_s8 + $0x20] sm:$0xff] }
  0x19   : > { %v1827_v28 = vld [vmem:[%s2973_s8 + $0x38] sm:$0xff]  ;;  %v1826_v29 = vld [vmem:[%s2973_s8 + $0x30] sm:$0xff]  ;;  %v1837_v30 = vld [vmem:[%s2973_s8 + $0x48] sm:$0xff] }
  0x1a   : > { %s1793_s23 = sshll.u32 %s2335_s15, 2  ;;  %472 = vperm.xlu1 %2074, %v454_v8   ;;  %467 = vperm.xlu0 %2073, %v453_v9   ;;  %v1836_v31 = vld [vmem:[%s2973_s8 + $0x40] sm:$0xff]  ;;  %v1839_v32 = vld [vmem:[%s2973_s8 + $0x58] sm:$0xff]  ;;  %v1838_v33 = vld [vmem:[%s2973_s8 + $0x50] sm:$0xff] }
  0x1b   : > { %s449_s17 = scalar_lea.vmem %s2966_s1, %s1793_s23  ;;  %v1501_v34 = vld [vmem:[%s2975_s10 + $0x8] sm:$0xff]  ;;  %v1500_v35 = vld [vmem:[%s2975_s10] sm:$0xff]  ;;  %v1503_v36 = vld [vmem:[%s2975_s10 + $0x18] sm:$0xff]  ;;  %s445_s23 = scalar_lea.vmem %s2965_s0, %s2335_s15 }
  0x1c   : > { %v961_v6 = vld [vmem:[%s449_s17] sm:$0xf]  ;;  %v1502_v37 = vld [vmem:[%s2975_s10 + $0x10] sm:$0xff]  ;;  %s440_s17 = sand.u32 1, %s2185_s26   ;;  %s1850_s15 = sshll.u32 %s2297_s29, 7 }
  0x1d   : > { %1895 = vmatprep.subr.msk.mxu0 %vm999_vm1, %v961_v6  ;;  %v1626_v38 = vld [vmem:[%s2977_s12] sm:$0xff]  ;;  %s2923_s21 = scalar_lea.hbm %s2978_s13, %s1850_s15  ;;  %s1707_s22 = scalar_lea.sflag [#allocation3], %s440_s17 }
  0x1e   : > { %1896 = vmatpush3.msk.msra.mxu0 %vm999_vm1, %v961_v6  ;;  %506 = vperm.xlu1 %2074, %v488_v12   ;;  %v1794_v39 = vld [vmem:[%s445_s23] ss:$0 sm:$0xff]  ;;  %s1792_s23 = sshll.u32 %s440_s17, 3  ;;  %s2205_s29 = smov [#allocation2]  }
  0x1f   : > { %1898 = vmatmul.mubr.msk.f32.vlgmr.msra.gmra.mrb[0].mxu0 %vm986_vm0, %v958_v7  ;;  %501 = vperm.xlu0 %2073, %v487_v13   ;;  %s442_s30 = scalar_lea.vmem [#allocation2], %s1792_s23  ;;  %s2135_s27 = sshll.u32 %s2205_s29, 4  ;;  %s2136_s27 = int_to_ptr.vmem [resolvable:$false] %s2135_s27 }
  0x20   : > { %1900 = vmatprep.mubr.msk.f32.mxu0 %vm986_vm0, %v959_v10  ;;  %s1720_s16 = sshll.u32 %s442_s30, 4  ;;  %s2137_s14 = scalar_lea.vmem %s2136_s27, 256  ;;  %s2925_s16 = int_to_ptr.vmem [resolvable:$true] %s1720_s16 }
  0x21   : > { %s2131_s24 = scalar_lea.vmem %s2925_s16, 128  ;;  %p2138_p0 = scmp.lt.s32.totalorder %s2925_s16, %s2136_s27 }
  0x22   : > { %973 = vperm.xlu1 %2074, %v963_v14   ;;  %p2132_p11 = scmp.ne.s32.totalorder %s2925_s16, %s2131_s24  ;;  %p2139_p1 = scmp.lt.s32.totalorder %s2137_s14, %s2131_s24 }
  0x23   : > { %1901 = vmatmul.mubr.msk.f32.gmra.mrb[2].mxu0 %vm986_vm0, %v960_v11  ;;  %968 = vperm.xlu0 %2073, %v962_v15  }
  0x24   : > { %p2133_p12 = pnand %p2132_p11, %p2314_p5  ;;  %p2140_p2 = por %p2139_p1, %p2138_p0 }
  0x26   : > { %983 = vperm.xlu1 %2074, %v965_v16   ;;  %p2134_p13 = pneg %p2133_p12 }
  0x27   : > { %978 = vperm.xlu0 %2073, %v964_v17  }
  0x28   : > { %p2141_p3 = pnand %p2140_p2, %p2134_p13 }
  0x2a   : > { %940 = vperm.xlu1 %2074, %v930_v18  }
  0x2b   : > { %935 = vperm.xlu0 %2073, %v929_v19  }
  0x2e   : > { %950 = vperm.xlu1 %2074, %v932_v20  }
  0x2f   : > { %945 = vperm.xlu0 %2073, %v931_v21   ;;  %v2196_v21 = vmov 920167782  }
  0x32   : > { %1111 = vperm.xlu1 %2074, %v1101_v22  }
  0x33   : > { %1106 = vperm.xlu0 %2073, %v1100_v23   ;;  %v2197_v23 = vmov 1326507024  }
  0x36   : > { %1121 = vperm.xlu1 %2074, %v1103_v24  }
  0x37   : > { %1116 = vperm.xlu0 %2073, %v1102_v25  }
  0x3a   : > { %1247 = vperm.xlu1 %2074, %v1825_v26   ;;  %v2198_v26 = vmov 2102212464  }
  0x3b   : > { %1242 = vperm.xlu0 %2073, %v1824_v27  }
  0x3e   : > { %1257 = vperm.xlu1 %2074, %v1827_v28  }
  0x3f   : > { %1252 = vperm.xlu0 %2073, %v1826_v29  }
  0x42   : > { %1382 = vperm.xlu1 %2074, %v1837_v30  }
  0x43   : > { %1377 = vperm.xlu0 %2073, %v1836_v31  }
  0x46   : > { %1392 = vperm.xlu1 %2074, %v1839_v32  }
  0x47   : > { %1387 = vperm.xlu0 %2073, %v1838_v33  }
  0x4a   : > { %1511 = vperm.xlu1 %2074, %v1501_v34   ;;  %v2199_v34 = vmov 683565275  }
  0x4b   : > { %1506 = vperm.xlu0 %2073, %v1500_v35  }
  0x4e   : > { %1521 = vperm.xlu1 %2074, %v1503_v36   ;;  %v2200_v36 = vmov 2475754826  }
  0x4f   : > { %1516 = vperm.xlu0 %2073, %v1502_v37  }
  0x53   : > { %1629 = vperm.xlu0 %2073, %v1626_v38  }
  0x91   : > { %v492_v40 = vpop.permute.xlu1 %491  ;;  %v458_v41 = vpop.permute.xlu0 %457 }
  0x92   : > { %v481_v42 = vmul.f32 %v1794_v39, %v458_v41  ;;  %v2201_v41 = vmov 2131351028  }
  0x94   : > { %v2451_v43 = vadd.f32 %v492_v40, %v481_v42 }
  0x95   : > { %v497_v44 = vpop.permute.xlu1 %496  ;;  %v463_v45 = vpop.permute.xlu0 %462 }
  0x96   : > { %v516_v46 = vand.u32 2139095040, %v2451_v43  ;;  %v482_v47 = vmul.f32 %v1794_v39, %v463_v45  ;;  %v513_v58 = vand.u32 2147483647, %v2451_v43 }
  0x98   : > { %v517_v48 = vshrl.u32 %v516_v46, 23  ;;  %v2454_v49 = vadd.f32 %v497_v44, %v482_v47  ;;  %v520_v3 = vand.u32 8388607, %v513_v58 }
  0x99   : > { %v473_v50 = vpop.permute.xlu1 %472  ;;  %v468_v51 = vpop.permute.xlu0 %467 }
  0x9a   : > { %v1795_v52 = vadd.s32 4294967169, %v517_v48  ;;  %v620_v53 = vand.u32 2139095040, %v2454_v49  ;;  %v484_v54 = vmul.f32 %v1794_v39, %v473_v50  ;;  %v483_v55 = vmul.f32 %v1794_v39, %v468_v51 }
  0x9b   : > { %v617_v2 = vand.u32 2147483647, %v2454_v49  ;;  %v521_v11 = vor.u32 8388608, %v520_v3 }
  0x9c   : > { %v523_v56 = vadd.s32 1, %v1795_v52  ;;  %v621_v57 = vshrl.u32 %v620_v53, 23 }
  0x9d   : > { %v507_v59 = vpop.permute.xlu1 %506  ;;  %v624_v10 = vand.u32 8388607, %v617_v2  ;;  %v2474_v19 = vshll.u32 %v521_v11, 8 }
  0x9e   : > { %v502_v60 = vpop.permute.xlu0 %501  ;;  %vm524_vm2 = vcmp.gt.s32.totalorder %v523_v56, 0  ;;  %v1799_v61 = vadd.s32 4294967169, %v621_v57  ;;  %v2458_v62 = vadd.f32 %v507_v59, %v484_v54 }
  0x9f   : > { %v2460_v63 = vadd.f32 %v502_v60, %v483_v55  ;;  %v525_v0 = vsel %vm524_vm2, %v523_v56, 0  ;;  %v625_v18 = vor.u32 8388608, %v624_v10 }
  0xa0   : > { %v627_v1 = vadd.s32 1, %v1799_v61  ;;  %v828_v4 = vand.u32 2139095040, %v2458_v62  ;;  %v2467_v6 = vand.u32 31, %v525_v0  ;;  %v2476_v20 = vshrl.u32 %v525_v0, 5 }
  0xa1   : > { %v724_v5 = vand.u32 2139095040, %v2460_v63  ;;  %v2493_v39 = vshll.u32 %v625_v18, 8 }
  0xa2   : > { %vm628_vm3 = vcmp.gt.s32.totalorder %v627_v1, 0  ;;  %v829_v7 = vshrl.u32 %v828_v4, 23  ;;  %v2472_v15 = vsub.s32 32, %v2467_v6  ;;  %v539_v27 = vshll.u32 %v2198_v26, %v2467_v6 }
  0xa3   : > { %v725_v8 = vshrl.u32 %v724_v5, 23  ;;  %v629_v9 = vsel %vm628_vm3, %v627_v1, 0  ;;  %v542_v32 = vshll.u32 %v2196_v21, %v2467_v6  ;;  %vm548_vm5 = vcmp.lt.s32.totalorder %v2476_v20, 4 }
  0xa4   : > { %v631_v12 = vand.u32 31, %v629_v9  ;;  %v1807_v13 = vadd.s32 4294967169, %v829_v7  ;;  %v630_v28 = vshrl.u32 %v629_v9, 5  ;;  %v540_v31 = vshrl.u32 %v2196_v21, %v2472_v15 }
  0xa5   : > { %v1803_v14 = vadd.s32 4294967169, %v725_v8  ;;  %v543_v33 = vshrl.u32 %v2197_v23, %v2472_v15  ;;  %v530_v46 = vshll.u32 %v2199_v34, %v2467_v6  ;;  %v529_v50 = vshrl.u32 %v2199_v34, %v2472_v15 }
  0xa6   : > { %v632_v16 = vsub.s32 32, %v631_v12  ;;  %v835_v17 = vadd.s32 1, %v1807_v13  ;;  %v646_v22 = vshll.u32 %v2196_v21, %v631_v12  ;;  %v643_v29 = vshll.u32 %v2198_v26, %v631_v12 }
  0xa7   : > { %v731_v25 = vadd.s32 1, %v1803_v14  ;;  %v634_v35 = vshll.u32 %v2199_v34, %v631_v12  ;;  %v637_v38 = vshll.u32 %v2200_v36, %v631_v12  ;;  %vm652_vm7 = vcmp.lt.s32.totalorder %v630_v28, 4 }
  0xa8   : > { %v647_v24 = vshrl.u32 %v2197_v23, %v632_v16  ;;  %v644_v30 = vshrl.u32 %v2196_v21, %v632_v16  ;;  %vm836_vm4 = vcmp.gt.s32.totalorder %v835_v17, 0  ;;  %v635_v37 = vshrl.u32 %v2200_v36, %v632_v16 }
  0xa9   : > { %vm732_vm6 = vcmp.gt.s32.totalorder %v731_v25, 0  ;;  %v638_v42 = vshrl.u32 %v2201_v41, %v632_v16  ;;  %v837_v45 = vsel %vm836_vm4, %v835_v17, 0  ;;  %v541_v47 = vor.u32 %v540_v31, %v539_v27 }
  0xaa   : > { %v648_v40 = vor.u32 %v647_v24, %v646_v22  ;;  %v645_v44 = vor.u32 %v644_v30, %v643_v29  ;;  %v544_v48 = vor.u32 %v543_v33, %v542_v32  ;;  %v531_v51 = vshrl.u32 %v2200_v36, %v2472_v15 }
  0xab   : > { %v2503_v52 = vsel %vm732_vm6, %v731_v25, 0  ;;  %v636_v53 = vor.u32 %v635_v37, %v634_v35  ;;  %v639_v54 = vor.u32 %v638_v42, %v637_v38  ;;  %v640_v55 = vshll.u32 %v2201_v41, %v631_v12 }
  0xac   : > { %v662_v56 = vsel %vm652_vm7, %v648_v40, 1326507024  ;;  %v2507_v57 = vand.u32 31, %v837_v45  ;;  %v641_v59 = vshrl.u32 %v2198_v26, %v632_v16  ;;  %vm649_vm8 = vcmp.lt.s32.totalorder %v630_v28, 1 }
  0xad   : > { %v658_v60 = vsel %vm652_vm7, %v645_v44, 920167782  ;;  %v633_v61 = vshrl.u32 %v2199_v34, %v632_v16  ;;  %vm651_vm9 = vcmp.lt.s32.totalorder %v630_v28, 3  ;;  %v533_v0 = vshll.u32 %v2200_v36, %v2467_v6 }
  0xae   : > { %v554_v1 = vsel %vm548_vm5, %v541_v47, 920167782  ;;  %v558_v3 = vsel %vm548_vm5, %v544_v48, 1326507024  ;;  %v642_v4 = vor.u32 %v641_v59, %v640_v55  ;;  %vm650_vm10 = vcmp.lt.s32.totalorder %v630_v28, 2 }
  0xaf   : > { %v2518_v5 = vshrl.u32 %v837_v45, 5  ;;  %v2521_v7 = vand.u32 31, %v2503_v52  ;;  %v657_v8 = vsel %vm649_vm8, %v636_v53, %v639_v54  ;;  %v663_v9 = vsel %vm651_vm9, %v645_v44, %v662_v56 }
  0xb0   : > { %v2525_v10 = vsub.s32 32, %v2507_v57  ;;  %v851_v11 = vshll.u32 %v2198_v26, %v2507_v57  ;;  %v654_v12 = vsel %vm652_vm7, %v642_v4, 2102212464  ;;  %v659_v13 = vsel %vm651_vm9, %v642_v4, %v658_v60 }
  0xb1   : > { %v653_v14 = vsel %vm649_vm8, %v633_v61, %v636_v53  ;;  %v655_v16 = vsel %vm651_vm9, %v639_v54, %v654_v12  ;;  %v660_v17 = vsel %vm650_vm10, %v657_v8, %v659_v13  ;;  %v661_v18 = vsel %vm649_vm8, %v639_v54, %v642_v4 }
  0xb2   : > { %v854_v22 = vshll.u32 %v2196_v21, %v2507_v57  ;;  %v664_v24 = vsel %vm650_vm10, %v661_v18, %v663_v9  ;;  %v2537_v25 = vmul.u32.u64.low %v2493_v39, %v660_v17  ;;  %v2538_v27 = vmul.u32.u64.high %v2493_v39, %v660_v17, %v2537_v25 }
  0xb3   : > { %v2542_v29 = vmul.u32.u64.low %v2493_v39, %v664_v24  ;;  %v2543_v30 = vmul.u32.u64.high %v2493_v39, %v664_v24, %v2542_v29  ;;  %v532_v31 = vor.u32 %v531_v51, %v530_v46  ;;  %v534_v32 = vshrl.u32 %v2201_v41, %v2472_v15 }
  0xb4   : > { %v656_v33 = vsel %vm650_vm10, %v653_v14, %v655_v16  ;;  %v536_v35 = vshll.u32 %v2201_v41, %v2467_v6  ;;  %v537_v37 = vshrl.u32 %v2198_v26, %v2472_v15  ;;  %vm545_vm11 = vcmp.lt.s32.totalorder %v2476_v20, 1 }
  0xb5   : > { %v852_v38 = vshrl.u32 %v2196_v21, %v2525_v10  ;;  %v855_v40 = vshrl.u32 %v2197_v23, %v2525_v10  ;;  %v535_v42 = vor.u32 %v534_v32, %v533_v0  ;;  %vm547_vm12 = vcmp.lt.s32.totalorder %v2476_v20, 3 }
  0xb6   : > { %v675_v28 = vadd.s32 1, %v2538_v27  ;;  %v538_v44 = vor.u32 %v537_v37, %v536_v35  ;;  %vm546_vm13 = vcmp.lt.s32.totalorder %v2476_v20, 2  ;;  %v559_v6 = vsel %vm547_vm12, %v541_v47, %v558_v3 }
  0xb7   : > { %v672_v45 = vmul.u32 %v2493_v39, %v656_v33  ;;  %vm674_vm14 = vc.u32 %v2543_v30, %v2537_v25  ;;  %v549_v15 = vsel %vm545_vm11, %v529_v50, %v532_v31  ;;  %v553_v46 = vsel %vm545_vm11, %v532_v31, %v535_v42 }
  0xb8   : > { %v676_v48 = vsel %vm674_vm14, %v675_v28, %v2538_v27  ;;  %v550_v51 = vsel %vm548_vm5, %v538_v44, 2102212464  ;;  %v555_v53 = vsel %vm547_vm12, %v538_v44, %v554_v1  ;;  %v557_v47 = vsel %vm545_vm11, %v535_v42, %v538_v44 }
  0xb9   : > { %v677_v54 = vadd.s32 %v676_v48, %v672_v45  ;;  %v551_v39 = vsel %vm547_vm12, %v535_v42, %v550_v51  ;;  %v556_v55 = vsel %vm546_vm13, %v553_v46, %v555_v53  ;;  %v560_v50 = vsel %vm546_vm13, %v557_v47, %v559_v6 }
  0xba   : > { %v2577_v56 = vsub.s32 32, %v2521_v7  ;;  %v2580_v59 = vmul.u32.u64.low %v2474_v19, %v560_v50  ;;  %v2581_v60 = vmul.u32.u64.high %v2474_v19, %v560_v50, %v2580_v59  ;;  %v825_v61 = vand.u32 2147483647, %v2458_v62 }
  0xbb   : > { %v853_v0 = vor.u32 %v852_v38, %v851_v11  ;;  %v678_v1 = vadd.s32 536870912, %v677_v54  ;;  %v2585_v3 = vmul.u32.u64.low %v2474_v19, %v556_v55  ;;  %v2586_v4 = vmul.u32.u64.high %v2474_v19, %v556_v55, %v2585_v3 }
  0xbc   : > { %v856_v8 = vor.u32 %v855_v40, %v854_v22  ;;  %v552_v9 = vsel %vm546_vm13, %v549_v15, %v551_v39  ;;  %v842_v12 = vshll.u32 %v2199_v34, %v2507_v57  ;;  %v843_v13 = vshrl.u32 %v2200_v36, %v2525_v10 }
  0xbd   : > { %v2595_v14 = vshrl.u32 %v678_v1, 30  ;;  %v845_v11 = vshll.u32 %v2200_v36, %v2507_v57  ;;  %v846_v16 = vshrl.u32 %v2201_v41, %v2525_v10  ;;  %v849_v17 = vshrl.u32 %v2198_v26, %v2525_v10 }
  0xbe   : > { %vm860_vm15 = vcmp.lt.s32.totalorder %v2518_v5, 4  ;;  %vm570_vm0 = vc.u32 %v2581_v60, %v2585_v3  ;;  %v832_v20 = vand.u32 8388607, %v825_v61  ;;  %v848_v18 = vshll.u32 %v2201_v41, %v2507_v57 }
  0xbf   : > { %v680_v22 = vshll.u32 %v2595_v14, 30  ;;  %v571_v24 = vadd.s32 1, %v2586_v4  ;;  %v844_v27 = vor.u32 %v843_v13, %v842_v12  ;;  %v847_v29 = vor.u32 %v846_v16, %v845_v11 }
  0xc0   : > { %v866_v31 = vsel %vm860_vm15, %v853_v0, 920167782  ;;  %v568_v32 = vmul.u32 %v2474_v19, %v552_v9  ;;  %v850_v33 = vor.u32 %v849_v17, %v848_v18  ;;  %v870_v35 = vsel %vm860_vm15, %v856_v8, 1326507024 }
  0xc1   : > { %v748_v37 = vshrl.u32 %v2196_v21, %v2577_v56  ;;  %v681_v38 = vsub.s32 %v677_v54, %v680_v22  ;;  %v572_v57 = vsel %vm570_vm0, %v571_v24, %v2586_v4  ;;  %v833_v42 = vor.u32 8388608, %v832_v20 }
  0xc2   : > { %v573_v40 = vadd.s32 %v572_v57, %v568_v32  ;;  %vm857_vm1 = vcmp.lt.s32.totalorder %v2518_v5, 1  ;;  %vm859_vm2 = vcmp.lt.s32.totalorder %v2518_v5, 3  ;;  %v751_v28 = vshrl.u32 %v2197_v23, %v2577_v56 }
  0xc3   : > { %v683_v19 = vsub.s32 0, %v681_v38  ;;  %v865_v44 = vsel %vm857_vm1, %v844_v27, %v847_v29  ;;  %v867_v6 = vsel %vm859_vm2, %v850_v33, %v866_v31  ;;  %vm858_vm3 = vcmp.lt.s32.totalorder %v2518_v5, 2 }
  0xc4   : > { %v574_v45 = vadd.s32 536870912, %v573_v40  ;;  %v869_v15 = vsel %vm857_vm1, %v847_v29, %v850_v33  ;;  %v871_v46 = vsel %vm859_vm2, %v853_v0, %v870_v35  ;;  %v747_v48 = vshll.u32 %v2198_v26, %v2521_v7 }
  0xc5   : > { %v750_v23 = vshll.u32 %v2196_v21, %v2521_v7  ;;  %v1800_v51 = vmin.u32 %v683_v19, %v681_v38  ;;  %v872_v53 = vsel %vm858_vm3, %v869_v15, %v871_v46  ;;  %v2640_v47 = vshrl.u32 %v2503_v52, 5 }
  0xc6   : > { %v2642_v54 = vshrl.u32 %v574_v45, 30  ;;  %v868_v39 = vsel %vm858_vm3, %v865_v44, %v867_v6  ;;  %v873_v55 = vshll.u32 %v833_v42, 8  ;;  %v2646_v50 = vor.u32 %v748_v37, %v747_v48 }
  0xc7   : > { %v752_v59 = vor.u32 %v751_v28, %v750_v23  ;;  %v685_v0 = vclz %v1800_v51  ;;  %v862_v21 = vsel %vm860_vm15, %v850_v33, 2102212464  ;;  %v841_v4 = vshrl.u32 %v2199_v34, %v2525_v10 }
  0xc8   : > { %v576_v1 = vshll.u32 %v2642_v54, 30  ;;  %v2653_v52 = vmul.u32.u64.low %v873_v55, %v872_v53  ;;  %v2654_v8 = vmul.u32.u64.high %v873_v55, %v872_v53, %v2653_v52  ;;  %vm756_vm4 = vcmp.lt.s32.totalorder %v2640_v47, 4 }
  0xc9   : > { %v1801_v9 = vadd.s32 4294967294, %v685_v0  ;;  %v2656_v12 = vmul.u32.u64.low %v873_v55, %v868_v39  ;;  %v2657_v13 = vmul.u32.u64.high %v873_v55, %v868_v39, %v2656_v12  ;;  %v861_v16 = vsel %vm857_vm1, %v841_v4, %v844_v27 }
  0xca   : > { %v2661_v11 = vsub.s32 %v573_v40, %v576_v1  ;;  %v863_v17 = vsel %vm859_vm2, %v847_v29, %v862_v21  ;;  %v762_v10 = vsel %vm756_vm4, %v2646_v50, 920167782  ;;  %vm619_vm5 = vcmp.lt.s32.totalorder %v2454_v49, 0 }
  0xcb   : > { %vm1802_vm6 = vcmp.lt.s32.totalorder %v1801_v9, 0  ;;  %v2673_v20 = vsel %vm756_vm4, %v752_v59, 1326507024  ;;  %v703_v22 = vsub.s32 4, %v2595_v14  ;;  %vm2679_vm7 = vcmp.le.f32.partialorder %v617_v2, 0.7853982 }
  0xcc   : > { %v688_v18 = vsel %vm1802_vm6, 0, %v1801_v9  ;;  %v579_v24 = vsub.s32 0, %v2661_v11  ;;  %v673_v29 = vadd.s32 %v2537_v25, %v2543_v30  ;;  %v864_v33 = vsel %vm858_vm3, %v861_v16, %v863_v17 }
  0xcd   : > { %v689_v31 = vsub.s32 32, %v688_v18  ;;  %v693_v32 = vsub.s32 4294967266, %v688_v18  ;;  %v569_v35 = vadd.s32 %v2585_v3, %v2581_v60  ;;  %vm882_vm8 = vc.u32 %v2654_v8, %v2656_v12 }
  0xce   : > { %v1796_v37 = vmin.u32 %v579_v24, %v2661_v11  ;;  %v883_v2 = vadd.s32 1, %v2657_v13  ;;  %v690_v57 = vshll.u32 %v681_v38, %v688_v18  ;;  %v721_v25 = vand.u32 2147483647, %v2460_v63 }
  0xcf   : > { %v691_v40 = vshrl.u32 %v673_v29, %v689_v31  ;;  %v694_v42 = vadd.s32 127, %v693_v32  ;;  %v2697_v5 = vsel %vm619_vm5, %v703_v22, %v2595_v14  ;;  %v880_v28 = vmul.u32 %v873_v55, %v864_v33 }
  0xd0   : > { %v581_v30 = vclz %v1796_v37  ;;  %v739_v60 = vshrl.u32 %v2200_v36, %v2577_v56  ;;  %v884_v44 = vsel %vm882_vm8, %v883_v2, %v2657_v13  ;;  %v742_v38 = vshrl.u32 %v2201_v41, %v2577_v56 }
  0xd1   : > { %v692_v3 = vor.u32 %v691_v40, %v690_v57  ;;  %v695_v19 = vshll.u32 %v694_v42, 23  ;;  %v885_v45 = vadd.s32 %v884_v44, %v880_v28  ;;  %v738_v15 = vshll.u32 %v2199_v34, %v2521_v7 }
  0xd2   : > { %v1797_v6 = vadd.s32 4294967294, %v581_v30  ;;  %v745_v14 = vshrl.u32 %v2198_v26, %v2577_v56  ;;  %v728_v48 = vand.u32 8388607, %v721_v25  ;;  %v741_v23 = vshll.u32 %v2200_v36, %v2521_v7 }
  0xd3   : > { %v696_v46 = vor.u32 4788187, %v695_v19  ;;  %v744_v51 = vshll.u32 %v2201_v41, %v2521_v7  ;;  %v699_v53 = vcvt.s32.f32 %v692_v3  ;;  %v886_v39 = vadd.s32 536870912, %v885_v45  ;;  %v1092_v19 = vld [vmem:[%s2972_s7] sm:$0xff] }
  0xd4   : > { %vm1798_vm9 = vcmp.lt.s32.totalorder %v1797_v6, 0  ;;  %v740_v55 = vor.u32 %v739_v60, %v738_v15  ;;  %v743_v21 = vor.u32 %v742_v38, %v741_v23  ;;  %v706_v26 = vsel %vm2679_vm7, 0, %v2697_v5 }
  0xd5   : > { %v697_v59 = vand.u32 2147483647, %v696_v46  ;;  %v584_v0 = vsel %vm1798_vm9, 0, %v1797_v6  ;;  %v746_v1 = vor.u32 %v745_v14, %v744_v51  ;;  %v2717_v9 = vshrl.u32 %v886_v39, 30 }
  0xd6   : > { %v585_v4 = vsub.s32 32, %v584_v0  ;;  %v589_v52 = vsub.s32 4294967266, %v584_v0  ;;  %v737_v41 = vshrl.u32 %v2199_v34, %v2577_v56  ;;  %vm753_vm10 = vcmp.lt.s32.totalorder %v2640_v47, 1 }
  0xd7   : > { %v700_v36 = vmul.f32 %v699_v53, %v697_v59  ;;  %vm755_vm11 = vcmp.lt.s32.totalorder %v2640_v47, 3  ;;  %v586_v7 = vshll.u32 %v2661_v11, %v584_v0  ;;  %v888_v17 = vshll.u32 %v2717_v9, 30 }
  0xd8   : > { %v587_v13 = vshrl.u32 %v569_v35, %v585_v4  ;;  %v590_v16 = vadd.s32 127, %v589_v52  ;;  %v729_v22 = vor.u32 8388608, %v728_v48  ;;  %v761_v24 = vsel %vm753_vm10, %v740_v55, %v743_v21 }
  0xd9   : > { %v701_v18 = vxor.u32 2147483648, %v700_v36  ;;  %v763_v29 = vsel %vm755_vm11, %v746_v1, %v762_v10  ;;  %v2729_v56 = vsub.s32 %v885_v45, %v888_v17  ;;  %v765_v32 = vsel %vm753_vm10, %v743_v21, %v746_v1 }
  0xda   : > { %v588_v31 = vor.u32 %v587_v13, %v586_v7  ;;  %v591_v34 = vshll.u32 %v590_v16, 23  ;;  %v599_v33 = vsub.s32 4, %v2642_v54  ;;  %vm754_vm12 = vcmp.lt.s32.totalorder %v2640_v47, 2  ;;  %v969_v7 = vpop.permute.xlu0 %968 }
  0xdb   : > { %v702_v11 = vsel %vm619_vm5, %v701_v18, %v700_v36  ;;  %v767_v35 = vsel %vm755_vm11, %v2646_v50, %v2673_v20  ;;  %v891_v2 = vsub.s32 0, %v2729_v56  ;;  %v758_v57 = vsel %vm756_vm4, %v746_v1, 2102212464  ;;  %v974_v1 = vpop.permute.xlu1 %973 }
  0xdc   : > { %v705_v10 = vsel %vm2679_vm7, %v2454_v49, %v702_v11  ;;  %v592_v37 = vor.u32 4788187, %v591_v34  ;;  %v764_v40 = vsel %vm754_vm12, %v761_v24, %v763_v29  ;;  %v768_v42 = vsel %vm754_vm12, %v765_v32, %v767_v35 }
  0xdd   : > { %2075 = vcosq.f32 %v705_v10  ;;  %v769_v5 = vshll.u32 %v729_v22, 8  ;;  %v595_v20 = vcvt.s32.f32 %v588_v31  ;;  %v1808_v27 = vmin.u32 %v891_v2, %v2729_v56 }
  0xde   : > { %2077 = vsinq.f32 %v705_v10  ;;  %v593_v50 = vand.u32 2147483647, %v592_v37  ;;  %v757_v30 = vsel %vm753_vm10, %v737_v41, %v740_v55  ;;  %v759_v28 = vsel %vm755_vm11, %v743_v21, %v758_v57 }
  0xdf   : > { %v2756_v60 = vmul.u32.u64.low %v769_v5, %v768_v42  ;;  %v2757_v3 = vmul.u32.u64.high %v769_v5, %v768_v42, %v2756_v60  ;;  %v893_v38 = vclz %v1808_v27  ;;  %vm1124_vm13 = vcmask 261120  }
  0xe0   : > { %v596_v44 = vmul.f32 %v595_v20, %v593_v50  ;;  %v2762_v6 = vmul.u32.u64.low %v769_v5, %v764_v40  ;;  %v2763_v45 = vmul.u32.u64.high %v769_v5, %v764_v40, %v2762_v6  ;;  %vm515_vm14 = vcmp.lt.s32.totalorder %v2451_v43, 0  ;;  %1911 = vmatprep.mubr.msk.f32.mxu1 %vm1124_vm13, %v1092_v19  ;;  %v2798_v20 = vpop.permute.xlu0 %978 }
  0xe1   : > { %v1809_v14 = vadd.s32 4294967294, %v893_v38  ;;  %v710_v46 = vadd.s32 3, %v706_v26  ;;  %vm2770_vm15 = vcmp.le.f32.partialorder %v513_v58, 0.7853982  ;;  %v600_v23 = vsel %vm515_vm14, %v599_v33, %v2642_v54 }
  0xe2   : > { %v597_v15 = vxor.u32 2147483648, %v596_v44  ;;  %v760_v51 = vsel %vm754_vm12, %v757_v30, %v759_v28  ;;  %vm778_vm1 = vc.u32 %v2757_v3, %v2762_v6  ;;  %v779_v39 = vadd.s32 1, %v2763_v45 }
  0xe3   : > { %vm1810_vm0 = vcmp.lt.s32.totalorder %v1809_v14, 0  ;;  %v881_v58 = vadd.s32 %v2656_v12, %v2654_v8  ;;  %v776_v47 = vmul.u32 %v769_v5, %v760_v51  ;;  %v711_v26 = vand.u32 3, %v710_v46  ;;  %v2796_v5 = vpop.permute.xlu1 %983 }
  0xe4   : > { %v598_v53 = vsel %vm515_vm14, %v597_v15, %v596_v44  ;;  %v896_v59 = vsel %vm1810_vm0, 0, %v1809_v14  ;;  %v602_v4 = vsel %vm2770_vm15, 0, %v600_v23  ;;  %v780_v52 = vsel %vm778_vm1, %v779_v39, %v2763_v45 }
  0xe5   : > { %v601_v55 = vsel %vm2770_vm15, %v2451_v43, %v598_v53  ;;  %v897_v54 = vsub.s32 32, %v896_v59  ;;  %v901_v0 = vsub.s32 4294967266, %v896_v59  ;;  %v781_v8 = vadd.s32 %v780_v52, %v776_v47 }
  0xe6   : > { %2079 = vcosq.f32 %v601_v55  ;;  %v606_v29 = vadd.s32 3, %v602_v4  ;;  %v898_v31 = vshll.u32 %v2729_v56, %v896_v59  ;;  %vm713_vm2 = vcmp.eq.s32.totalorder %v711_v26, 0 }
  0xe7   : > { %v2076_v21 = vpop.eup %2075  ;;  %2081 = vsinq.f32 %v601_v55  ;;  %v899_v13 = vshrl.u32 %v881_v58, %v897_v54  ;;  %v902_v16 = vadd.s32 127, %v901_v0  ;;  %v782_v32 = vadd.s32 536870912, %v781_v8  ;;  %v941_v51 = vpop.permute.xlu1 %940 }
  0xe8   : > { %v2078_v41 = vpop.eup %2077  ;;  %v717_v18 = vxor.u32 2147483648, %v2076_v21  ;;  %vm716_vm3 = vcmp.eq.s32.totalorder %v711_v26, 2  ;;  %v607_v40 = vand.u32 3, %v606_v29  ;;  %vm712_vm4 = vcmp.lt.s32.totalorder %v711_v26, 2  ;;  %v936_v55 = vpop.permute.xlu0 %935 }
  0xe9   : > { %v714_v17 = vxor.u32 2147483648, %v2078_v41  ;;  %v903_v34 = vshll.u32 %v902_v16, 23  ;;  %v900_v33 = vor.u32 %v899_v13, %v898_v31  ;;  %v2791_v10 = vshrl.u32 %v782_v32, 30 }
  0xea   : > { %v718_v57 = vsel %vm716_vm3, %v717_v18, %v2078_v41  ;;  %vm709_vm5 = vweird.f32 %v2454_v49  ;;  %vm612_vm6 = vcmp.eq.s32.totalorder %v607_v40, 2  ;;  %vm609_vm7 = vcmp.eq.s32.totalorder %v607_v40, 0 }
  0xeb   : > { %v904_v35 = vor.u32 4788187, %v903_v34  ;;  %v715_v2 = vsel %vm713_vm2, %v2076_v21, %v714_v17  ;;  %v784_v56 = vshll.u32 %v2791_v10, 30  ;;  %v907_v30 = vcvt.s32.f32 %v900_v33 }
  0xec   : > { %v719_v27 = vsel %vm712_vm4, %v715_v2, %v718_v57  ;;  %vm608_vm8 = vcmp.lt.s32.totalorder %v607_v40, 2  ;;  %vm605_vm9 = vweird.f32 %v2451_v43  ;;  %vm827_vm10 = vcmp.lt.s32.totalorder %v2458_v62, 0 }
  0xed   : > { %v905_v42 = vand.u32 2147483647, %v904_v35  ;;  %v785_v28 = vsub.s32 %v781_v8, %v784_v56  ;;  %v720_v15 = vsel %vm709_vm5, nan, %v719_v27  ;;  %vm2813_vm12 = vcmp.le.f32.partialorder %v825_v61, 0.7853982 }
  0xee   : > { %v2802_v39 = vmul.f32 %v941_v51, %v720_v15  ;;  %v911_v17 = vsub.s32 4, %v2717_v9  ;;  %v807_v34 = vsub.s32 4, %v2791_v10  ;;  %vm723_vm14 = vcmp.lt.s32.totalorder %v2460_v63, 0 }
  0xef   : > { %v908_v38 = vmul.f32 %v907_v30, %v905_v42  ;;  %v787_v45 = vsub.s32 0, %v785_v28  ;;  %vm722_vm15 = vcmp.le.f32.partialorder %v721_v25, 0.7853982  ;;  %vm917_vm3 = vweird.f32 %v2458_v62 }
  0xf0   : > { %v2080_v50 = vpop.eup %2079  ;;  %v808_v57 = vsel %vm723_vm14, %v807_v34, %v2791_v10 }
  0xf1   : > { %v2082_v60 = vpop.eup %2081  ;;  %v613_v19 = vxor.u32 2147483648, %v2080_v50  ;;  %v1804_v48 = vmin.u32 %v787_v45, %v785_v28  ;;  %v909_v58 = vxor.u32 2147483648, %v908_v38 }
  0xf2   : > { %v1899_v36 = vpop.f32.mrb[0].mxu0  ;;  %v610_v44 = vxor.u32 2147483648, %v2082_v60 }
  0xf3   : > { %v1069_v12 = vpop.f32.mrb[1].mxu0  ;;  %v1075_v22 = vadd.f32 %v1899_v36, %v974_v1  ;;  %v614_v14 = vsel %vm612_vm6, %v613_v19, %v2082_v60  ;;  %v789_v59 = vclz %v1804_v48  ;;  %v910_v43 = vsel %vm827_vm10, %v909_v58, %v908_v38 }
  0xf4   : > { %v1070_v24 = vadd.f32 %v1069_v12, %v969_v7  ;;  %v611_v46 = vsel %vm609_vm7, %v2080_v50, %v610_v44  ;;  %v777_v36 = vadd.s32 %v2762_v6, %v2757_v3  ;;  %v913_v13 = vsel %vm2813_vm12, %v2458_v62, %v910_v43 }
  0xf5   : > { %2083 = vtanh.f32 %v1075_v22  ;;  %v615_v53 = vsel %vm608_vm8, %v611_v46, %v614_v14  ;;  %v1805_v47 = vadd.s32 4294967294, %v789_v59  ;;  %v912_v3 = vsel %vm827_vm10, %v911_v17, %v2717_v9  ;;  %v951_v14 = vpop.permute.xlu1 %950 }
  0xf6   : > { %v2789_v11 = vpop.f32.mrb[2].mxu0  ;;  %2085 = vtanh.f32 %v1070_v24  ;;  %v616_v49 = vsel %vm605_vm9, nan, %v615_v53  ;;  %v914_v29 = vsel %vm2813_vm12, 0, %v912_v3  ;;  %v810_v50 = vsel %vm722_vm15, 0, %v808_v57  ;;  %v946_v53 = vpop.permute.xlu0 %945 }
  0xf7   : > { %v2793_v37 = vpop.f32.mrb[3].mxu0  ;;  %v2804_v0 = vmul.f32 %v936_v55, %v616_v49  ;;  %vm1806_vm11 = vcmp.lt.s32.totalorder %v1805_v47, 0  ;;  %2087 = vcosq.f32 %v913_v13  ;;  %v918_v33 = vadd.s32 3, %v914_v29 }
  0xf8   : > { %v792_v26 = vsel %vm1806_vm11, 0, %v1805_v47  ;;  %2089 = vsinq.f32 %v913_v13  ;;  %v1085_v42 = vadd.f32 %v2789_v11, %v2796_v5  ;;  %v814_v60 = vadd.s32 3, %v810_v50  ;;  %v1095_v47 = vld [vmem:[%s2972_s7 + $0x18] sm:$0xff] }
  0xf9   : > { %v793_v41 = vsub.s32 32, %v792_v26  ;;  %v797_v7 = vsub.s32 4294967266, %v792_v26  ;;  %v794_v16 = vshll.u32 %v785_v28, %v792_v26  ;;  %v919_v56 = vand.u32 3, %v918_v33  ;;  %v1822_v33 = vld [vmem:[%s2972_s7 + $0x30] sm:$0xff] }
  0xfa   : > { %v1080_v28 = vadd.f32 %v2793_v37, %v2798_v20  ;;  %v815_v19 = vand.u32 3, %v814_v60  ;;  %vm813_vm7 = vweird.f32 %v2460_v63  ;;  %v1107_v43 = vpop.permute.xlu0 %1106  ;;  %vm2203_vm8 = vmmov 0  }
  0xfb   : > { %v795_v8 = vshrl.u32 %v777_v36, %v793_v41  ;;  %v798_v12 = vadd.s32 127, %v797_v7  ;;  %vm921_vm0 = vcmp.eq.s32.totalorder %v919_v56, 0  ;;  %vm924_vm1 = vcmp.eq.s32.totalorder %v919_v56, 2 }
  0xfc   : > { %vm920_vm2 = vcmp.lt.s32.totalorder %v919_v56, 2  ;;  %vm820_vm4 = vcmp.eq.s32.totalorder %v815_v19, 2  ;;  %vm817_vm5 = vcmp.eq.s32.totalorder %v815_v19, 0  ;;  %vm816_vm6 = vcmp.lt.s32.totalorder %v815_v19, 2 }
  0xfd   : > { %v796_v61 = vor.u32 %v795_v8, %v794_v16  ;;  %v799_v18 = vshll.u32 %v798_v12, 23 }
  0xfe   : > { %v1117_v13 = vpop.permute.xlu0 %1116 }
  0xff   : > { %v2084_v23 = vpop.eup %2083  ;;  %v800_v22 = vor.u32 4788187, %v799_v18  ;;  %v803_v24 = vcvt.s32.f32 %v796_v61 }
 0x100   : > { %v2086_v54 = vpop.eup %2085  ;;  %v1097_v21 = vadd.f32 %v2084_v23, %v2802_v39 }
 0x101   : > { %v1096_v1 = vadd.f32 %v2086_v54, %v2804_v0  ;;  %v801_v6 = vand.u32 2147483647, %v800_v22  ;;  %v2088_v35 = vpop.eup %2087  ;;  %v1093_v54 = vld [vmem:[%s2972_s7 + $0x8] sm:$0xff] }
 0x102   : > { %v2090_v9 = vpop.eup %2089  ;;  %v925_v30 = vxor.u32 2147483648, %v2088_v35 }
 0x103   : > { %v1970_v4 = vpack.c.bf16 %v1097_v21, %v1096_v1  ;;  %v804_v31 = vmul.f32 %v803_v24, %v801_v6  ;;  %v922_v27 = vxor.u32 2147483648, %v2090_v9  ;;  %v1820_v21 = vld [vmem:[%s2972_s7 + $0x20] sm:$0xff]  ;;  %v1112_v1 = vpop.permute.xlu1 %1111 }
 0x104   : > { %v926_v10 = vsel %vm924_vm1, %v925_v30, %v2090_v9  ;;  %1925 = vmatprep.mubr.msk.f32.mxu0 %vm1124_vm13, %v1820_v21  ;;  %v1243_v9 = vpop.permute.xlu0 %1242 }
 0x105   : > { %1971 = vmatprep.subr.bf16.mxu1 %v1970_v4  ;;  %v805_v32 = vxor.u32 2147483648, %v804_v31  ;;  %v923_v25 = vsel %vm921_vm0, %v2088_v35, %v922_v27  ;;  %v1823_v35 = vld [vmem:[%s2972_s7 + $0x38] sm:$0xff] }
 0x106   : > { %1973 = vmatpush3.bf16.msra.mxu1 %v1970_v4  ;;  %v927_v44 = vsel %vm920_vm2, %v923_v25, %v926_v10 }
 0x107   : > { %v806_v2 = vsel %vm723_vm14, %v805_v32, %v804_v31  ;;  %v928_v45 = vsel %vm917_vm3, nan, %v927_v44  ;;  %v1122_v41 = vpop.permute.xlu1 %1121  ;;  %v1821_v32 = vld [vmem:[%s2972_s7 + $0x28] sm:$0xff] }
 0x108   : > { %v809_v40 = vsel %vm722_vm15, %v2460_v63, %v806_v2  ;;  %v2839_v48 = vmul.f32 %v951_v14, %v928_v45  ;;  %v1094_v63 = vld [vmem:[%s2972_s7 + $0x10] sm:$0xff]  ;;  %v1832_v2 = vld [vmem:[%s2972_s7 + $0x40] sm:$0xff] }
 0x109   : > { %2091 = vcosq.f32 %v809_v40 }
 0x10a   : > { %2093 = vsinq.f32 %v809_v40 }
 0x10b   : > { %2095 = vtanh.f32 %v1085_v42  ;;  %v1248_v57 = vpop.permute.xlu1 %1247 }
 0x10c   : > { %2097 = vtanh.f32 %v1080_v28  ;;  %v1253_v28 = vpop.permute.xlu0 %1252 }
 0x10f   : > { %v1258_v27 = vpop.permute.xlu1 %1257 }
 0x113   : > { %v2092_v38 = vpop.eup %2091 }
 0x114   : > { %v2094_v11 = vpop.eup %2093  ;;  %v821_v5 = vxor.u32 2147483648, %v2092_v38 }
 0x115   : > { %v818_v15 = vxor.u32 2147483648, %v2094_v11  ;;  %v2096_v20 = vpop.eup %2095 }
 0x116   : > { %v822_v37 = vsel %vm820_vm4, %v821_v5, %v2094_v11  ;;  %v2098_v51 = vpop.eup %2097  ;;  %v1099_v62 = vadd.f32 %v2096_v20, %v2839_v48 }
 0x117   : > { %v819_v46 = vsel %vm817_vm5, %v2092_v38, %v818_v15 }
 0x118   : > { %v823_v23 = vsel %vm816_vm6, %v819_v46, %v822_v37  ;;  %v1833_v46 = vld [vmem:[%s2972_s7 + $0x48] sm:$0xff] }
 0x119   : > { %v824_v55 = vsel %vm813_vm7, nan, %v823_v23  ;;  %v1383_v23 = vpop.permute.xlu1 %1382 }
 0x11a   : > { %v2842_v49 = vmul.f32 %v946_v53, %v824_v55 }
 0x11c   : > { %v1098_v58 = vadd.f32 %v2098_v51, %v2842_v49  ;;  %v1378_v51 = vpop.permute.xlu0 %1377 }
 0x11e   : > { %v1974_v59 = vpack.c.bf16 %v1099_v62, %v1098_v58  ;;  %v1393_v58 = vpop.permute.xlu1 %1392 }
 0x120   : > { %1975 = vmatprep.subr.bf16.mxu1 %v1974_v59 }
 0x121   : > { %1977 = vmatpush3.bf16.msra.mxu1 %v1974_v59 }
 0x124   : > { %1912 = vmatmul.mubr.msk.f32.vlgmr.msra.gmra.mrb[0].mxu1 %vm1124_vm13, %v1093_v54  ;;  %v1388_v54 = vpop.permute.xlu0 %1387 }
 0x125   : > { %1914 = vmatprep.mubr.msk.f32.mxu1 %vm1124_vm13, %v1094_v63 }
 0x128   : > { %1915 = vmatmul.mubr.msk.f32.gmra.mrb[2].mxu1 %vm1124_vm13, %v1095_v47 }
 0x129   : > { %1939 = vmatprep.mubr.msk.f32.mxu1 %vm1124_vm13, %v1832_v2 }
 0x1f7   : > { %v1913_v26 = vpop.f32.mrb[0].mxu1 }
 0x1f8   : > { %v1209_v4 = vadd.f32 %v1913_v26, %v1112_v1  ;;  %v1203_v52 = vpop.f32.mrb[1].mxu1 }
 0x1f9   : > { %v1204_v36 = vadd.f32 %v1203_v52, %v1107_v43 }
 0x1fa   : > { %2099 = vtanh.f32 %v1209_v4 }
 0x1fb   : > { %2101 = vtanh.f32 %v1204_v36  ;;  %v1916_v7 = vpop.f32.mrb[2].mxu1 }
 0x1fc   : > { %v1219_v16 = vadd.f32 %v1916_v7, %v1122_v41  ;;  %v1213_v8 = vpop.f32.mrb[3].mxu1  ;;  %v1497_v41 = vld [vmem:[%s2974_s9 + $0x8] sm:$0xff]  ;;  %v1498_v7 = vld [vmem:[%s2974_s9 + $0x10] sm:$0xff] }
 0x1fd   : > { %v1214_v12 = vadd.f32 %v1213_v8, %v1117_v13  ;;  %v1499_v13 = vld [vmem:[%s2974_s9 + $0x18] sm:$0xff]  ;;  %v2204_v8 = vmov 0.0  }
 0x1fe   : > { %2103 = vtanh.f32 %v1219_v16  ;;  %v2202_v16 = vmov 0.0|0.0  }
 0x1ff   : > { %2105 = vtanh.f32 %v1214_v12  ;;  %v1512_v12 = vpop.permute.xlu1 %1511 }
 0x204   : > { %v2100_v17 = vpop.eup %2099 }
 0x205   : > { %v2102_v61 = vpop.eup %2101  ;;  %v1232_v18 = vadd.f32 %v2100_v17, %v2802_v39  ;;  %v1507_v17 = vpop.permute.xlu0 %1506 }
 0x206   : > { %v1231_v22 = vadd.f32 %v2102_v61, %v2804_v0 }
 0x208   : > { %v2104_v3 = vpop.eup %2103  ;;  %v1978_v6 = vpack.c.bf16 %v1232_v18, %v1231_v22 }
 0x209   : > { %v2106_v24 = vpop.eup %2105  ;;  %v1234_v29 = vadd.f32 %v2104_v3, %v2839_v48 }
 0x20a   : > { %1979 = vmatprep.subr.bf16.mxu0 %v1978_v6  ;;  %v1233_v31 = vadd.f32 %v2106_v24, %v2842_v49 }
 0x20b   : > { %1981 = vmatpush3.bf16.msra.mxu0 %v1978_v6  ;;  %v1522_v6 = vpop.permute.xlu1 %1521 }
 0x20c   : > { %v1982_v34 = vpack.c.bf16 %v1234_v29, %v1233_v31  ;;  %v1517_v29 = vpop.permute.xlu0 %1516 }
 0x20e   : > { %1983 = vmatprep.subr.bf16.mxu0 %v1982_v34 }
 0x20f   : > { %1985 = vmatpush3.bf16.msra.mxu0 %v1982_v34 }
 0x212   : > { %1926 = vmatmul.mubr.msk.f32.vlgmr.msra.gmra.mrb[4].mxu0 %vm1124_vm13, %v1821_v32 }
 0x213   : > { %1928 = vmatprep.mubr.msk.f32.mxu0 %vm1124_vm13, %v1822_v33 }
 0x216   : > { %1929 = vmatmul.mubr.msk.f32.gmra.mrb[6].mxu0 %vm1124_vm13, %v1823_v35 }
 0x2e5   : > { %v1927_v40 = vpop.f32.mrb[4].mxu0 }
 0x2e6   : > { %v1344_v42 = vadd.f32 %v1927_v40, %v1248_v57  ;;  %v1338_v56 = vpop.f32.mrb[5].mxu0 }
 0x2e7   : > { %v1339_v50 = vadd.f32 %v1338_v56, %v1243_v9  ;;  %v1630_v56 = vpop.permute.xlu0 %1629 }
 0x2e8   : > { %2107 = vtanh.f32 %v1344_v42  ;;  %v1625_v42 = vld [vmem:[%s2976_s11] sm:$0xff] }
 0x2e9   : > { %2109 = vtanh.f32 %v1339_v50  ;;  %v1930_v30 = vpop.f32.mrb[6].mxu0 }
 0x2ea   : > { %v1354_v60 = vadd.f32 %v1930_v30, %v1258_v27  ;;  %v1348_v25 = vpop.f32.mrb[7].mxu0 }
 0x2eb   : > { %v1349_v10 = vadd.f32 %v1348_v25, %v1253_v28 }
 0x2ec   : > { %2111 = vtanh.f32 %v1354_v60 }
 0x2ed   : > { %2113 = vtanh.f32 %v1349_v10 }
 0x2f2   : > { %v2108_v19 = vpop.eup %2107 }
 0x2f3   : > { %v2110_v44 = vpop.eup %2109  ;;  %v1367_v38 = vadd.f32 %v2108_v19, %v2802_v39  ;;  %v1834_v39 = vld [vmem:[%s2972_s7 + $0x50] sm:$0xff] }
 0x2f4   : > { %v1366_v11 = vadd.f32 %v2110_v44, %v2804_v0  ;;  %v1835_v0 = vld [vmem:[%s2972_s7 + $0x58] sm:$0xff] }
 0x2f6   : > { %v2112_v5 = vpop.eup %2111  ;;  %v1986_v45 = vpack.c.bf16 %v1367_v38, %v1366_v11 }
 0x2f7   : > { %v2114_v15 = vpop.eup %2113  ;;  %v1369_v37 = vadd.f32 %v2112_v5, %v2839_v48  ;;  %v1496_v48 = vld [vmem:[%s2974_s9] sm:$0xff] }
 0x2f8   : > { %1987 = vmatprep.subr.bf16.mxu1 %v1986_v45  ;;  %v1368_v20 = vadd.f32 %v2114_v15, %v2842_v49  ;;  %1953 = vmatprep.mubr.msk.f32.mxu0 %vm1124_vm13, %v1496_v48 }
 0x2f9   : > { %1989 = vmatpush3.bf16.msra.mxu1 %v1986_v45 }
 0x2fa   : > { %v1990_v14 = vpack.c.bf16 %v1369_v37, %v1368_v20 }
 0x2fc   : > { %1991 = vmatprep.subr.bf16.mxu1 %v1990_v14 }
 0x2fd   : > { %1993 = vmatpush3.bf16.msra.mxu1 %v1990_v14 }
 0x2fe   : > { %2002 = vmatprep.subr.bf16.mxu1 %v2202_v16 }
 0x300   : > { %1940 = vmatmul.mubr.msk.f32.vlgmr.msra.gmra.mrb[4].mxu1 %vm1124_vm13, %v1833_v46 }
 0x301   : > { %1942 = vmatprep.mubr.msk.f32.mxu1 %vm1124_vm13, %v1834_v39 }
 0x304   : > { %1943 = vmatmul.mubr.msk.f32.gmra.mrb[6].mxu1 %vm1124_vm13, %v1835_v0 }
 0x305   : > { %1967 = vmatprep.mubr.msk.f32.mxu1 %vm2203_vm8, %v2204_v8 }
 0x3d3   : > { %v1941_v53 = vpop.f32.mrb[4].mxu1 }
 0x3d4   : > { %v1479_v55 = vadd.f32 %v1941_v53, %v1383_v23  ;;  %v1473_v49 = vpop.f32.mrb[5].mxu1 }
 0x3d5   : > { %v1474_v62 = vadd.f32 %v1473_v49, %v1378_v51 }
 0x3d6   : > { %2115 = vtanh.f32 %v1479_v55 }
 0x3d7   : > { %2117 = vtanh.f32 %v1474_v62  ;;  %v1944_v59 = vpop.f32.mrb[6].mxu1 }
 0x3d8   : > { %v1489_v63 = vadd.f32 %v1944_v59, %v1393_v58  ;;  %v1483_v47 = vpop.f32.mrb[7].mxu1 }
 0x3d9   : > { %v1484_v21 = vadd.f32 %v1483_v47, %v1388_v54 }
 0x3da   : > { %2119 = vtanh.f32 %v1489_v63 }
 0x3db   : > { %2121 = vtanh.f32 %v1484_v21 }
 0x3e0   : > { %v2116_v1 = vpop.eup %2115 }
 0x3e1   : > { %v2118_v43 = vpop.eup %2117 }
 0x3e2   : > { %v1994_v26 = vpack.c.bf16 %v2116_v1, %v2118_v43 }
 0x3e4   : > { %v2120_v4 = vpop.eup %2119  ;;  %1995 = vmatprep.subr.bf16.mxu0 %v1994_v26 }
 0x3e5   : > { %v2122_v52 = vpop.eup %2121  ;;  %1997 = vmatpush3.bf16.msra.mxu0 %v1994_v26 }
 0x3e6   : > { %v1998_v36 = vpack.c.bf16 %v2120_v4, %v2122_v52 }
 0x3e8   : > { %1999 = vmatprep.subr.bf16.mxu0 %v1998_v36 }
 0x3e9   : > { %2001 = vmatpush3.bf16.msra.mxu0 %v1998_v36 }
 0x3ec   : > { %1954 = vmatmul.mubr.msk.f32.vlgmr.msra.gmra.mrb[8].mxu0 %vm1124_vm13, %v1497_v41 }
 0x3ed   : > { %1956 = vmatprep.mubr.msk.f32.mxu0 %vm1124_vm13, %v1498_v7 }
 0x3f0   : > { %1957 = vmatmul.mubr.msk.f32.gmra.mrb[10].mxu0 %vm1124_vm13, %v1499_v13 }
 0x4bf   : > { %v1955_v61 = vpop.f32.mrb[8].mxu0 }
 0x4c0   : > { %v1608_v18 = vadd.f32 %v1955_v61, %v1512_v12  ;;  %v1602_v22 = vpop.f32.mrb[9].mxu0 }
 0x4c1   : > { %v1603_v3 = vadd.f32 %v1602_v22, %v1507_v17 }
 0x4c2   : > { %2123 = vtanh.f32 %v1608_v18 }
 0x4c3   : > { %2125 = vtanh.f32 %v1603_v3  ;;  %v1958_v24 = vpop.f32.mrb[10].mxu0 }
 0x4c4   : > { %v1618_v31 = vadd.f32 %v1958_v24, %v1522_v6  ;;  %v1612_v34 = vpop.f32.mrb[11].mxu0 }
 0x4c5   : > { %v1613_v32 = vadd.f32 %v1612_v34, %v1517_v29 }
 0x4c6   : > { %2127 = vtanh.f32 %v1618_v31 }
 0x4c7   : > { %2129 = vtanh.f32 %v1613_v32 }
 0x4cc   : > { %v2124_v33 = vpop.eup %2123 }
 0x4cd   : > { %v2126_v35 = vpop.eup %2125 }
 0x4ce   : > { %v2003_v2 = vpack.c.bf16 %v2124_v33, %v2126_v35 }
 0x4d0   : > { %v2128_v57 = vpop.eup %2127  ;;  %2004 = vmatpush3.bf16.msra.mxu1 %v2003_v2 }
 0x4d1   : > { %v2130_v9 = vpop.eup %2129  ;;  %2005 = vmatprep.subr.bf16.mxu1 %v2202_v16 }
 0x4d2   : > { %v2006_v40 = vpack.c.bf16 %v2128_v57, %v2130_v9 }
 0x4d4   : > { %2007 = vmatpush3.bf16.msra.mxu1 %v2006_v40 }
 0x4d7   : > { %1968 = vmatmul.mubr.msk.f32.vlgmr.msra.gmra.mrb[8].mxu1 %vm1124_vm13, %v1625_v42 }
 0x5aa   : > { %v1701_v50 = vpop.f32.mrb[8].mxu1 }
 0x5ab   : > { %v1702_v27 = vadd.f32 %v1701_v50, %v1630_v56  ;;  %v1969_v30 = vpop.f32.mrb[9].mxu1 }
 0x5ad   : > { %1705 = vst [vmem:[%s442_s30] sm:$0xff] %v1702_v27 }
 0x5ae   : > { %2144 = shalt.err (!%p2141_p3)
}
 0x5af   : > { %s2145_s17 = scalar_lea.hbm %s2923_s21, 128  ;;  %s2149_s30 = scalar_lea.hbm %s2978_s13, 256 }
 0x5b0   : > { %p2146_p4 = scmp.ne.s32.totalorder %s2923_s21, %s2145_s17  ;;  %p2150_p9 = scmp.lt.u32.totalorder %s2923_s21, %s2978_s13 }
 0x5b1   : > { %p2151_p10 = scmp.lt.u32.totalorder %s2149_s30, %s2145_s17  ;;  %p2153_p12 = scmp.lt.u32.totalorder %s2145_s17, %s2923_s21 }
 0x5b2   : > { %p2147_p7 = pnand %p2146_p4, %p2314_p5 }
 0x5b3   : > { %p2152_p11 = por %p2151_p10, %p2150_p9 }
 0x5b4   : > { %p2148_p8 = pneg %p2147_p7 }
 0x5b5   : > { %p2154_p13 = por %p2153_p12, %p2152_p11 }
 0x5b7   : > { %p2155_p0 = pnand %p2154_p13, %p2148_p8 }
 0x5b9   : > { %2158 = shalt.err (!%p2155_p0)
}
 0x5ba   : > { %2024 = dma.vmem_to_hbm [thread:$0]  (%p2314_p5), %s2925_s16, 128, %s2923_s21, %s1707_s22  }
 0x5bb PF: > { %p2030_p1 = scmp.ge.s32.totalorder %s2193_s28, 2  ;;  %s1732_s29 = sand.u32 1, %s2181_s25  }
 0x5bc   : > { %s1733_s27 = scalar_lea.sflag [#allocation3], %s1732_s29 }
 0x5bd   : > { %p2027_p2 = pnand %p2030_p1, %p2318_p6 }
 0x5bf   : > { %2176 = dma.done.wait (!%p2027_p2), %s1733_s27, 128  }
 0x5c0   : > { %2178 = vsyncadd (!%p2027_p2), %s1733_s27, 4294967168  ;;  %s2996_s28 = sld [smem:[#allocation6_spill]]  ;;  %s2997_s14 = sld [smem:[#allocation5_spill]] }
 0x5c1   : > { %s2998_s27 = sld [smem:[#allocation7_spill]]  ;;  %s2999_s25 = smov %s2185_s26 }
 0x5c6   : > { %p23_p3 = scmp.ge.s32.totalorder %s2996_s28, 4   ;;  %s3000_s26 = smov %s2997_s14 }
 0x5c8   :  { %25 = sbr.rel (!%p23_p3) target bundleno = 3 (0x3), region = 114 }
 0x5cf   :  { %1738 = vsyncpa [#allocation3], 1 }
 0x5d0   :  { %1740 = vsyncpa [#allocation3 + $0x1], 1 }

</bundles_post_ra>
